<compile_context>
chip_gen: v7x
topology: tpu7x:2x2x1
jax: 0.10.0
libtpu: 0.0.40
codegen_flags: <defaults>
</compile_context>

<pallas_src>
import functools
import math

import jax
import jax.numpy as jnp
from jax.experimental import pallas as pl
from jax.experimental.pallas import tpu as pltpu

_INV_SQRT2 = 1.0 / math.sqrt(2.0)


# ----------------------------------------------------------------------------
# Small static helpers (all trace-time Python).
# ----------------------------------------------------------------------------
def _round_up(x, m):
    return (x + m - 1) // m * m


def _cdiv(a, b):
    return -(-a // b)


def _vmem_capacity_bytes():
    """Per-TensorCore VMEM capacity; conservative fallback if unavailable."""
    try:
        info = pltpu.get_tpu_info()
        cap = getattr(info, "vmem_capacity_bytes", None)
        if cap:
            return int(cap)
    except Exception:
        pass
    return 64 * 1024 * 1024  # v7x-sized fallback (safe lower bound everywhere)


def _choose_row_tile(M, tm):
    """Row tile: multiple of 16 (bf16 sublane packing), clamped for tiny M,
    and nudged so the number of row tiles is even (v7x megacore balance)."""
    tm_eff = max(16, min(tm, _round_up(M, 16)))
    g = _cdiv(M, tm_eff)
    if g > 1 and g % 2 == 1:
        tm_alt = _round_up(_cdiv(M, g + 1), 16)
        if tm_alt >= 64 and _cdiv(M, tm_alt) % 2 == 0:
            tm_eff = tm_alt
    return tm_eff


def _pick_hidden_block(hidden, target=1024):
    """Largest 128-multiple divisor of `hidden` that is <= target, else the
    full hidden dim (single chunk)."""
    if hidden <= target:
        return hidden
    for tk in range(target, 127, -128):
        if hidden % tk == 0:
            return tk
    return hidden


def _gelu(h, approximate):
    if approximate:
        # tanh form -> transcendental goes to the EUP slot (free vs VALU).
        return jax.nn.gelu(h, approximate=True)
    # Exact erf form, matching torch nn.GELU() default.
    return 0.5 * h * (1.0 + jax.lax.erf(h * _INV_SQRT2))


# ----------------------------------------------------------------------------
# Kernels.
# ----------------------------------------------------------------------------
def _make_resident_kernel(tk, num_chunks, approximate):
    """Weights fully resident in VMEM; hidden dim chunked inside the kernel."""

    def kernel(x_ref, w1_ref, b1_ref, w2_ref, b2_ref, o_ref):
        # In-kernel bf16 cast of the activation tile (cheap VPU pass, hidden
        # under the MXU); accumulation stays f32.
        x = x_ref[...].astype(jnp.bfloat16)
        acc = jnp.zeros((x.shape[0], o_ref.shape[1]), jnp.float32)
        # Static Python loop: chunk offsets are Python ints -> zero-cost
        # static ref slices; each (tm, tk) intermediate dies within its
        # iteration, so only the (tm, dim) accumulator stays live.
        for c in range(num_chunks):
            k0 = c * tk
            h = jnp.dot(x, w1_ref[:, k0:k0 + tk],
                        preferred_element_type=jnp.float32)
            h = h + b1_ref[:, k0:k0 + tk]
            h = _gelu(h, approximate)
            acc = acc + jnp.dot(h.astype(jnp.bfloat16),
                                w2_ref[k0:k0 + tk, :],
                                preferred_element_type=jnp.float32)
        o_ref[...] = (acc + b2_ref[...]).astype(o_ref.dtype)

    return kernel


def _make_stream_kernel(approximate):
    """Weights streamed chunk-by-chunk via a second ('arbitrary') grid axis;
    (tm, dim) f32 accumulator scratch with pl.when init/finalize."""

    def kernel(x_ref, w1_ref, b1_ref, w2_ref, b2_ref, o_ref, acc_ref):
        k = pl.program_id(1)

        @pl.when(k == 0)
        def _():
            acc_ref[...] = jnp.zeros_like(acc_ref)

        x = x_ref[...].astype(jnp.bfloat16)
        h = jnp.dot(x, w1_ref[...], preferred_element_type=jnp.float32)
        h = h + b1_ref[...]
        h = _gelu(h, approximate)
        acc_ref[...] += jnp.dot(h.astype(jnp.bfloat16), w2_ref[...],
                                preferred_element_type=jnp.float32)

        @pl.when(k == pl.num_programs(1) - 1)
        def _():
            o_ref[...] = (acc_ref[...] + b2_ref[...]).astype(o_ref.dtype)

    return kernel


# ----------------------------------------------------------------------------
# Wrapper.
# ----------------------------------------------------------------------------
@functools.partial(
    jax.jit,
    static_argnames=("tm", "approximate_gelu", "hidden_block", "stream_weights"))
def feed_forward(x, w1, b1, w2, b2, *, tm=256, approximate_gelu=True,
                 hidden_block=None, stream_weights=None):
    """ViT FeedForward: y = GELU(x @ w1 + b1) @ w2 + b2.

    x : (B, N, dim); w1 : (dim, hidden); b1 : (hidden,);
    w2 : (hidden, dim); b2 : (dim,).  Returns (B, N, dim) in x.dtype.
    Pass bf16 weights to avoid a per-call cast (recommended: cast once).
    """
    B, N, dim = x.shape
    hidden = w1.shape[1]
    M = B * N

    x2d = x.reshape(M, dim)
    # Weights feed the MXU in bf16 (f32 accumulation).  astype is a no-op if
    # the caller already keeps bf16 weights.
    w1_bf = w1 if w1.dtype == jnp.bfloat16 else w1.astype(jnp.bfloat16)
    w2_bf = w2 if w2.dtype == jnp.bfloat16 else w2.astype(jnp.bfloat16)
    b1_2d = b1.reshape(1, hidden).astype(jnp.float32)
    b2_2d = b2.reshape(1, dim).astype(jnp.float32)

    tm_eff = _choose_row_tile(M, tm)
    num_row_tiles = _cdiv(M, tm_eff)
    x_item = jnp.dtype(x.dtype).itemsize
    vmem_cap = _vmem_capacity_bytes()

    # Resident-weight footprint (single-buffered bf16 weights + f32 biases).
    weight_bytes = 2 * dim * hidden * 2 + 4 * (hidden + dim)
    if stream_weights is None:
        # Weight residency stops fitting first on v7x (64 MiB) — switch to the
        # streamed K-split when the resident weights would crowd VMEM.
        stream_weights = weight_bytes > int(0.55 * vmem_cap)

    if not stream_weights:
        # ------------------------------------------------------------------
        # Resident-weight path (default for ViT-sized MLPs).
        # ------------------------------------------------------------------
        tk = hidden_block if hidden_block is not None else _pick_hidden_block(hidden)
        if hidden % tk != 0:
            tk = hidden
        num_chunks = hidden // tk
        kernel = _make_resident_kernel(tk, num_chunks, approximate_gelu)

        io_bytes = 2 * x_item * tm_eff * dim * 2          # x + out tiles, 2 buffers each
        body_bytes = (2 + 4) * tm_eff * dim                # bf16 x copy + f32 accumulator
        chunk_bytes = (4 + 2 + 8) * tm_eff * tk            # h f32 + h bf16 + GELU temps
        vmem_limit = int(2 * (weight_bytes + io_bytes + body_bytes + chunk_bytes))
        vmem_limit = max(vmem_limit, 32 * 1024 * 1024)
        vmem_limit = min(vmem_limit, int(0.9 * vmem_cap))

        out2d = pl.pallas_call(
            kernel,
            out_shape=jax.ShapeDtypeStruct((M, dim), x.dtype),
            grid_spec=pltpu.PrefetchScalarGridSpec(
                num_scalar_prefetch=0,
                grid=(num_row_tiles,),
                in_specs=[
                    # x rows: streamed (default double-buffering); the ragged
                    # last tile is a masked edge block (no wrapper-side pad —
                    # garbage rows are computed but their writes are masked).
                    pl.BlockSpec((tm_eff, dim), lambda i: (i, 0)),
                    # Weights/biases resident across the grid -> single buffer.
                    pl.BlockSpec((dim, hidden), lambda i: (0, 0),
                                 pipeline_mode=pl.Buffered(1)),
                    pl.BlockSpec((1, hidden), lambda i: (0, 0),
                                 pipeline_mode=pl.Buffered(1)),
                    pl.BlockSpec((hidden, dim), lambda i: (0, 0),
                                 pipeline_mode=pl.Buffered(1)),
                    pl.BlockSpec((1, dim), lambda i: (0, 0),
                                 pipeline_mode=pl.Buffered(1)),
                ],
                out_specs=pl.BlockSpec((tm_eff, dim), lambda i: (i, 0)),
            ),
            compiler_params=pltpu.CompilerParams(
                dimension_semantics=("parallel",),
                vmem_limit_bytes=vmem_limit,
            ),
        )(x2d, w1_bf, b1_2d, w2_bf, b2_2d)
    else:
        # ------------------------------------------------------------------
        # Streamed-weight path (large MLPs, esp. v7x): grid axis over hidden
        # chunks, accumulator scratch, pl.when init/finalize.
        # ------------------------------------------------------------------
        tk = (hidden_block if hidden_block is not None
              else _pick_hidden_block(hidden, target=512))
        if hidden % tk != 0:
            # Streaming needs exact hidden chunks (masked OOB reads would
            # contaminate the accumulator) -> fall back to a single chunk.
            tk = hidden
        num_k = hidden // tk
        kernel = _make_stream_kernel(approximate_gelu)

        io_bytes = 2 * x_item * tm_eff * dim * 2
        wchunk_bytes = 2 * (2 * dim * tk + 2 * tk * dim + 4 * tk)  # dbl-buffered chunks
        body_bytes = (2 + 4) * tm_eff * dim + (4 + 2 + 8) * tm_eff * tk
        acc_bytes = 4 * tm_eff * dim
        vmem_limit = int(2 * (io_bytes + wchunk_bytes + body_bytes
                              + acc_bytes + 4 * dim))
        vmem_limit = max(vmem_limit, 32 * 1024 * 1024)
        vmem_limit = min(vmem_limit, int(0.9 * vmem_cap))

        out2d = pl.pallas_call(
            kernel,
            out_shape=jax.ShapeDtypeStruct((M, dim), x.dtype),
            grid_spec=pltpu.PrefetchScalarGridSpec(
                num_scalar_prefetch=0,
                grid=(num_row_tiles, num_k),
                in_specs=[
                    pl.BlockSpec((tm_eff, dim), lambda i, k: (i, 0)),
                    pl.BlockSpec((dim, tk), lambda i, k: (0, k)),
                    pl.BlockSpec((1, tk), lambda i, k: (0, k)),
                    pl.BlockSpec((tk, dim), lambda i, k: (k, 0)),
                    pl.BlockSpec((1, dim), lambda i, k: (0, 0),
                                 pipeline_mode=pl.Buffered(1)),
                ],
                out_specs=pl.BlockSpec((tm_eff, dim), lambda i, k: (i, 0)),
                scratch_shapes=[pltpu.VMEM((tm_eff, dim), jnp.float32)],
            ),
            compiler_params=pltpu.CompilerParams(
                dimension_semantics=("parallel", "arbitrary"),
                vmem_limit_bytes=vmem_limit,
            ),
        )(x2d, w1_bf, b1_2d, w2_bf, b2_2d)

    return out2d.reshape(B, N, dim)


# ----------------------------------------------------------------------------
# Reference + self-test.
# ----------------------------------------------------------------------------
def _reference(x, w1, b1, w2, b2):
    h = x @ w1 + b1
    h = 0.5 * h * (1.0 + jax.lax.erf(h * _INV_SQRT2))  # exact erf GELU (torch default)
    return h @ w2 + b2


def _check(out, ref, name):
    assert out.shape == ref.shape, f"{name}: shape mismatch"
    # bf16 matmul operands (f32 accumulation) + tanh-approx GELU -> loose tol.
    assert jnp.allclose(out, ref, atol=5e-2, rtol=5e-2), f"{name}: mismatch vs reference"


if __name__ == "__main__":
    key = jax.random.PRNGKey(0)
    kx, kw1, kb1, kw2, kb2, kw3, kb3, kw4, kb4 = jax.random.split(key, 9)

    # --- Config A: small ViT-like FFN (dim=32, hidden=64) -------------------
    B, N, dim, hidden = 2, 8, 32, 64
    x = jax.random.normal(kx, (B, N, dim), dtype=jnp.float32)
    lim1 = 1.0 / math.sqrt(dim)
    w1 = jax.random.uniform(kw1, (dim, hidden), jnp.float32, -lim1, lim1)
    b1 = jax.random.uniform(kb1, (hidden,), jnp.float32, -lim1, lim1)
    lim2 = 1.0 / math.sqrt(hidden)
    w2 = jax.random.uniform(kw2, (hidden, dim), jnp.float32, -lim2, lim2)
    b2 = jax.random.uniform(kb2, (dim,), jnp.float32, -lim2, lim2)
    # Cast weights to bf16 ONCE, outside the hot path (perf feedback).
    w1_bf, w2_bf = w1.astype(jnp.bfloat16), w2.astype(jnp.bfloat16)

    ref = _reference(x, w1, b1, w2, b2)
    out = jax.block_until_ready(feed_forward(x, w1_bf, b1, w2_bf, b2))
    _check(out, ref, "resident/approx-gelu")

    # Exact-erf GELU path (parity with torch nn.GELU() default).
    out_exact = jax.block_until_ready(
        feed_forward(x, w1_bf, b1, w2_bf, b2, approximate_gelu=False))
    _check(out_exact, ref, "resident/exact-gelu")

    # Ragged row count (M not a multiple of the tile) -> masked edge block.
    x_odd = jax.random.normal(kx, (B, 7, dim), dtype=jnp.float32)
    out_odd = jax.block_until_ready(feed_forward(x_odd, w1_bf, b1, w2_bf, b2))
    _check(out_odd, _reference(x_odd, w1, b1, w2, b2), "resident/ragged-rows")

    # --- Config B: hidden=256 to exercise the chunked and streamed paths ----
    hidden_b = 256
    w3 = jax.random.uniform(kw3, (dim, hidden_b), jnp.float32, -lim1, lim1)
    b3 = jax.random.uniform(kb3, (hidden_b,), jnp.float32, -lim1, lim1)
    lim3 = 1.0 / math.sqrt(hidden_b)
    w4 = jax.random.uniform(kw4, (hidden_b, dim), jnp.float32, -lim3, lim3)
    b4 = jax.random.uniform(kb4, (dim,), jnp.float32, -lim3, lim3)
    w3_bf, w4_bf = w3.astype(jnp.bfloat16), w4.astype(jnp.bfloat16)
    ref_b = _reference(x, w3, b3, w4, b4)

    # Resident path with in-kernel hidden chunking (2 chunks of 128).
    out_chunk = jax.block_until_ready(
        feed_forward(x, w3_bf, b3, w4_bf, b4,
                     hidden_block=128, stream_weights=False))
    _check(out_chunk, ref_b, "resident/hidden-chunked")

    # Streamed-weight path (forced) with a hidden grid axis + accumulator.
    out_stream = jax.block_until_ready(
        feed_forward(x, w3_bf, b3, w4_bf, b4,
                     hidden_block=128, stream_weights=True))
    _check(out_stream, ref_b, "streamed/hidden-grid")

    print("KERNEL_OK")
</pallas_src>

<mosaic_0001>
module attributes {stable_mosaic.version = 11 : i64} {
  func.func @kernel(%arg0: i32, %arg1: memref<16x32xf32, #tpu.memory_space<vmem>>, %arg2: memref<32x64xbf16, #tpu.memory_space<vmem>>, %arg3: memref<1x64xf32, #tpu.memory_space<vmem>>, %arg4: memref<64x32xbf16, #tpu.memory_space<vmem>>, %arg5: memref<1x32xf32, #tpu.memory_space<vmem>>, %arg6: memref<16x32xf32, #tpu.memory_space<vmem>>) attributes {dimension_semantics = [#tpu.dimension_semantics<parallel>], iteration_bounds = array<i64: 1>, scalar_prefetch = 0 : i64, scratch_operands = 0 : i64, tpu.core_type = #tpu.core_type<tc>, window_params = [{transform_indices = @transform_0, window_bounds = array<i64: 16, 32>}, {pipeline_mode = #tpu.pipeline_mode<synchronous>, transform_indices = @transform_1, window_bounds = array<i64: 32, 64>}, {pipeline_mode = #tpu.pipeline_mode<synchronous>, transform_indices = @transform_2, window_bounds = array<i64: 1, 64>}, {pipeline_mode = #tpu.pipeline_mode<synchronous>, transform_indices = @transform_3, window_bounds = array<i64: 64, 32>}, {pipeline_mode = #tpu.pipeline_mode<synchronous>, transform_indices = @transform_4, window_bounds = array<i64: 1, 32>}, {transform_indices = @transform_5, window_bounds = array<i64: 16, 32>}]} {
    %c0 = arith.constant 0 : index
    %c0_0 = arith.constant 0 : index
    %0 = vector.load %arg1[%c0, %c0_0] : memref<16x32xf32, #tpu.memory_space<vmem>>, vector<16x32xf32>
    %1 = arith.truncf %0 : vector<16x32xf32> to vector<16x32xbf16>
    %cst = arith.constant 0.000000e+00 : f32
    %2 = vector.broadcast %cst : f32 to vector<16x32xf32>
    %c0_1 = arith.constant 0 : index
    %c0_2 = arith.constant 0 : index
    %3 = vector.load %arg2[%c0_1, %c0_2] : memref<32x64xbf16, #tpu.memory_space<vmem>>, vector<32x64xbf16>
    %cst_3 = arith.constant dense<0.000000e+00> : vector<16x64xf32>
    %4 = tpu.matmul %1, %3, %cst_3 {dimension_numbers = #tpu.dot_dimension_numbers<[1], [0], [0], [1], [0, 0, 1, 1], [], []>} : vector<16x32xbf16>, vector<32x64xbf16>, vector<16x64xf32> -> vector<16x64xf32>
    %c0_4 = arith.constant 0 : index
    %c0_5 = arith.constant 0 : index
    %5 = vector.load %arg3[%c0_4, %c0_5] : memref<1x64xf32, #tpu.memory_space<vmem>>, vector<1x64xf32>
    %6 = vector.broadcast %5 : vector<1x64xf32> to vector<16x64xf32>
    %7 = arith.addf %4, %6 : vector<16x64xf32>
    %8 = arith.mulf %7, %7 : vector<16x64xf32>
    %9 = arith.mulf %7, %8 : vector<16x64xf32>
    %cst_6 = arith.constant 4.471500e-02 : f32
    %10 = vector.broadcast %cst_6 : f32 to vector<16x64xf32>
    %11 = arith.mulf %10, %9 : vector<16x64xf32>
    %12 = arith.addf %7, %11 : vector<16x64xf32>
    %cst_7 = arith.constant 0.797884583 : f32
    %13 = vector.broadcast %cst_7 : f32 to vector<16x64xf32>
    %14 = arith.mulf %13, %12 : vector<16x64xf32>
    %15 = math.tanh %14 : vector<16x64xf32>
    %cst_8 = arith.constant 1.000000e+00 : f32
    %16 = vector.broadcast %cst_8 : f32 to vector<16x64xf32>
    %17 = arith.addf %16, %15 : vector<16x64xf32>
    %cst_9 = arith.constant 5.000000e-01 : f32
    %18 = vector.broadcast %cst_9 : f32 to vector<16x64xf32>
    %19 = arith.mulf %18, %17 : vector<16x64xf32>
    %20 = arith.mulf %7, %19 : vector<16x64xf32>
    %21 = arith.truncf %20 : vector<16x64xf32> to vector<16x64xbf16>
    %c0_10 = arith.constant 0 : index
    %c0_11 = arith.constant 0 : index
    %22 = vector.load %arg4[%c0_10, %c0_11] : memref<64x32xbf16, #tpu.memory_space<vmem>>, vector<64x32xbf16>
    %cst_12 = arith.constant dense<0.000000e+00> : vector<16x32xf32>
    %23 = tpu.matmul %21, %22, %cst_12 {dimension_numbers = #tpu.dot_dimension_numbers<[1], [0], [0], [1], [0, 0, 1, 1], [], []>} : vector<16x64xbf16>, vector<64x32xbf16>, vector<16x32xf32> -> vector<16x32xf32>
    %24 = arith.addf %2, %23 : vector<16x32xf32>
    %c0_13 = arith.constant 0 : index
    %c0_14 = arith.constant 0 : index
    %25 = vector.load %arg5[%c0_13, %c0_14] : memref<1x32xf32, #tpu.memory_space<vmem>>, vector<1x32xf32>
    %26 = vector.broadcast %25 : vector<1x32xf32> to vector<16x32xf32>
    %27 = arith.addf %24, %26 : vector<16x32xf32>
    %c0_15 = arith.constant 0 : index
    %c0_16 = arith.constant 0 : index
    %28 = vector.load %arg6[%c0_15, %c0_16] : memref<16x32xf32, #tpu.memory_space<vmem>>, vector<16x32xf32>
    tpu.vector_store %arg6[%c0_15, %c0_16], %27 {strides = array<i32>} : memref<16x32xf32, #tpu.memory_space<vmem>>, vector<16x32xf32>,
    return
  }
  func.func @transform_0(%arg0: i32) -> (i32, i32) {
    %c0_i32 = arith.constant 0 : i32
    %c0_i32_0 = arith.constant 0 : i32
    return %arg0, %c0_i32 : i32, i32
  }
  func.func @transform_1(%arg0: i32) -> (i32, i32) {
    %c0_i32 = arith.constant 0 : i32
    %c0_i32_0 = arith.constant 0 : i32
    %c0_i32_1 = arith.constant 0 : i32
    return %c0_i32, %c0_i32_0 : i32, i32
  }
  func.func @transform_2(%arg0: i32) -> (i32, i32) {
    %c0_i32 = arith.constant 0 : i32
    %c0_i32_0 = arith.constant 0 : i32
    %c0_i32_1 = arith.constant 0 : i32
    return %c0_i32, %c0_i32_0 : i32, i32
  }
  func.func @transform_3(%arg0: i32) -> (i32, i32) {
    %c0_i32 = arith.constant 0 : i32
    %c0_i32_0 = arith.constant 0 : i32
    %c0_i32_1 = arith.constant 0 : i32
    return %c0_i32, %c0_i32_0 : i32, i32
  }
  func.func @transform_4(%arg0: i32) -> (i32, i32) {
    %c0_i32 = arith.constant 0 : i32
    %c0_i32_0 = arith.constant 0 : i32
    %c0_i32_1 = arith.constant 0 : i32
    return %c0_i32, %c0_i32_0 : i32, i32
  }
  func.func @transform_5(%arg0: i32) -> (i32, i32) {
    %c0_i32 = arith.constant 0 : i32
    %c0_i32_0 = arith.constant 0 : i32
    return %arg0, %c0_i32 : i32, i32
  }
}

</mosaic_0001>

<bundles_post_ra>
// kernel: feed_forward.1
= control target key start
LH: loop header
LB: loop body
LE: loop exit
PB: predicated region body
PF: predicated region fallthrough
CT: control target
= control target key end

     0   :  { %v291_v1 = vmov 0.0   ;;  %vm292_vm0 = vmmov 0   ;;  %s371_s0 = inlined_call_operand.vmem [shape: f32[16,32], index: 0, kind: input, shape index: {}]   ;;  %s372_s1 = inlined_call_operand.vmem [shape: bf16[32,64], index: 1, kind: input, shape index: {}]   ;;  %s373_s2 = inlined_call_operand.vmem [shape: f32[1,64], index: 2, kind: input, shape index: {}]   ;;  %s374_s3 = inlined_call_operand.vmem [shape: bf16[64,32], index: 3, kind: input, shape index: {}]   ;;  %s375_s4 = inlined_call_operand.vmem [shape: f32[1,32], index: 4, kind: input, shape index: {}]   ;;  %s376_s5 = inlined_call_operand.hbm [shape: f32[16,32], index: 5, kind: output, shape index: {}]  }
   0x1   :  { %v257_v0 = vld [vmem:[%s372_s1] sm:$0xff]   ;;  %232 = vmatprep.subr.bf16.mxu0 %v291_v1  ;;  %240 = vmatprep.subr.bf16.mxu1 %v291_v1  ;;  %v258_v2 = vld [vmem:[%s372_s1 + $0x8] sm:$0xff]  }
   0x2   :  { %233 = vmatpush3.bf16.msra.mxu0 %v257_v0  ;;  %236 = vmatprep.mubr.msk.bf16.mxu0 %vm292_vm0, %v291_v1  ;;  %v22_v3 = vld [vmem:[%s371_s0] sm:$0xff]  ;;  %v23_v4 = vld [vmem:[%s371_s0 + $0x8] sm:$0xff] }
   0x3   :  { %234 = vmatprep.subr.bf16.mxu0 %v291_v1  ;;  %248 = vmatprep.mubr.msk.bf16.mxu1 %vm292_vm0, %v291_v1  ;;  %v24_v5 = vpack.c.bf16 %v23_v4, %v22_v3 }
   0x4   :  { %10 = vsyncpa [#allocation3], 0  ;;  %vm48_vm1 = vcmask 261120   ;;  %v259_v6 = vld [vmem:[%s374_s3] sm:$0xff]   ;;  %v260_v7 = vld [vmem:[%s374_s3 + $0x8] sm:$0xff]   ;;  %vm151_vm2 = vcmask 523264  }
   0x5   :  { %241 = vmatpush3.bf16.msra.mxu1 %v259_v6  ;;  %v261_v8 = vld [vmem:[%s374_s3 + $0x10] sm:$0xff]   ;;  %v262_v9 = vld [vmem:[%s374_s3 + $0x18] sm:$0xff]   ;;  %v214_v10 = vld [vmem:[%s373_s2] ss:$0 sm:$0xff]  ;;  %s293_s9 = smov [#allocation2]  }
   0x6   :  { %235 = vmatpush3.bf16.msra.mxu0 %v258_v2  ;;  %242 = vmatprep.subr.bf16.mxu1 %v291_v1  ;;  %v218_v36 = vld [vmem:[%s375_s4] ss:$0 sm:$0xff]  ;;  %s203_s10 = sshll.u32 %s293_s9, 4  ;;  %s204_s10 = int_to_ptr.vmem [resolvable:$true] %s203_s10 }
   0x7   :  { %s267_s11 = scalar_lea.vmem %s204_s10, 256  ;;  %p272_p1 = scmp.lt.s32.totalorder %s204_s10, %s204_s10 }
   0x8   :  { %p268_p0 = scmp.ne.s32.totalorder %s204_s10, %s267_s11  ;;  %p273_p2 = scmp.lt.s32.totalorder %s267_s11, %s267_s11 }
   0x9   :  { %237 = vmatmul.mubr.msk.bf16.vlgmr.msra.gmra.mrb[0].mxu0 %vm48_vm1, %v24_v5  ;;  %243 = vmatpush3.bf16.msra.mxu1 %v260_v7 }
   0xa   :  { %244 = vmatprep.subr.bf16.mxu1 %v291_v1  ;;  %p274_p3 = por %p273_p2, %p272_p1 }
   0xc   :  { %p275_p4 = pnand %p274_p3, %p268_p0 }
   0xd   :  { %245 = vmatpush3.bf16.msra.mxu1 %v261_v8 }
   0xe   :  { %246 = vmatprep.subr.bf16.mxu1 %v291_v1 }
  0x11   :  { %247 = vmatpush3.bf16.msra.mxu1 %v262_v9 }
  0xdc   :  { %v86_v11 = vpop.f32.mrb[0].mxu0 }
  0xdd   :  { %v87_v12 = vadd.f32 %v214_v10, %v86_v11  ;;  %v238_v13 = vpop.f32.mrb[1].mxu0 }
  0xde   :  { %v89_v14 = vpop.f32.mrb[2].mxu0 }
  0xdf   :  { %v93_v15 = vmul.f32 %v87_v12, %v87_v12  ;;  %v90_v16 = vadd.f32 %v214_v10, %v89_v14  ;;  %v239_v17 = vpop.f32.mrb[3].mxu0 }
  0xe1   :  { %v95_v18 = vmul.f32 %v93_v15, %v87_v12  ;;  %v94_v19 = vmul.f32 %v90_v16, %v90_v16 }
  0xe3   :  { %v97_v20 = vmul.f32 0.044715, %v95_v18  ;;  %v96_v21 = vmul.f32 %v94_v19, %v90_v16 }
  0xe5   :  { %v99_v22 = vadd.f32 %v97_v20, %v87_v12  ;;  %v98_v23 = vmul.f32 0.044715, %v96_v21 }
  0xe7   :  { %v101_v24 = vmul.f32 0.7978846, %v99_v22  ;;  %v100_v25 = vadd.f32 %v98_v23, %v90_v16 }
  0xe9   :  { %263 = vtanh.f32 %v101_v24  ;;  %v102_v26 = vmul.f32 0.7978846, %v100_v25 }
  0xeb   :  { %265 = vtanh.f32 %v102_v26 }
  0xf3   :  { %v264_v27 = vpop.eup %263 }
  0xf4   :  { %v105_v28 = vadd.f32 1.0, %v264_v27 }
  0xf5   :  { %v266_v29 = vpop.eup %265 }
  0xf6   :  { %v107_v30 = vmul.f32 0.5, %v105_v28  ;;  %v106_v31 = vadd.f32 1.0, %v266_v29 }
  0xf8   :  { %v108_v32 = vmul.f32 0.5, %v106_v31  ;;  %v109_v33 = vmul.f32 %v107_v30, %v87_v12 }
  0xfa   :  { %v110_v34 = vmul.f32 %v108_v32, %v90_v16 }
  0xfc   :  { %v111_v35 = vpack.c.bf16 %v110_v34, %v109_v33 }
  0xfe   :  { %249 = vmatmul.mubr.msk.bf16.vlgmr.msra.gmra.mrb[0].mxu1 %vm151_vm2, %v111_v35 }
 0x1d1   :  { %v189_v37 = vpop.f32.mrb[0].mxu1 }
 0x1d2   :  { %v190_v38 = vadd.f32 %v218_v36, %v189_v37  ;;  %v250_v39 = vpop.f32.mrb[1].mxu1 }
 0x1d3   :  { %v192_v40 = vpop.f32.mrb[2].mxu1 }
 0x1d4   :  { %196 = vst.msk [vmem:[#allocation2] sm:$0xff] %vm48_vm1, %v190_v38  ;;  %v193_v41 = vadd.f32 %v218_v36, %v192_v40  ;;  %v251_v42 = vpop.f32.mrb[3].mxu1 }
 0x1d6   :  { %197 = vst.msk [vmem:[#allocation2 + $0x8] sm:$0xff] %vm48_vm1, %v193_v41 }
 0x1d7   :  { %278 = shalt.err (!%p275_p4)
}
 0x1d8   :  { %s279_s13 = scalar_lea.hbm %s376_s5, 256 }
 0x1d9   :  { %p280_p5 = scmp.ne.s32.totalorder %s376_s5, %s279_s13  ;;  %p283_p6 = scmp.lt.u32.totalorder %s279_s13, %s376_s5 }
 0x1db   :  { %p285_p7 = pnand %p283_p6, %p280_p5 }
 0x1dd   :  { %288 = shalt.err (!%p285_p7)
}
 0x1de   :  { %s294_s18 = smov 128   ;;  %s295_s19 = smov 8  }
 0x1df   :  { %209 = dma.vmem_to_hbm [thread:$0]  %s204_s10, 256, %s376_s5, [#allocation3], %s294_s18, %s294_s18, %s295_s19  }
 0x1e0   :  { %289 = dma.done.wait [#allocation3], 256  }
 0x1e1   :  { %290 = vsyncadd [#allocation3], 4294967040 }
 0x1e2   :  { %213 = vsyncpa [#allocation3], 1 }

</bundles_post_ra>
